<compile_context>
chip_gen: v7x
topology: tpu7x:2x2x1
jax: 0.10.0
libtpu: 0.0.40
codegen_flags: <defaults>
</compile_context>

<pallas_src>
import functools

import jax
import jax.numpy as jnp
import numpy as np
from jax.experimental import pallas as pl
from jax.experimental.pallas import tpu as pltpu


def _round_up(v, m):
    return ((v + m - 1) // m) * m


def _vmem_capacity_bytes():
    """Best-effort per-core VMEM capacity; conservative (v7x) fallback."""
    try:
        info = pltpu.get_tpu_info()
        cap = getattr(info, "vmem_capacity_bytes", None)
        if cap:
            return int(cap)
    except Exception:
        pass
    return 64 << 20


def _col_tile(k):
    """Lane tile for the class dim: multiple of 128; 256 when it divides the padded width."""
    kp128 = _round_up(max(k, 1), 128)
    if kp128 <= 128:
        return 128
    return 256 if kp128 % 256 == 0 else 128


def prepare_cls_head_params(weight_t, bias, *, param_dtype=jnp.bfloat16):
    """One-time (model-init) parameter prep.

    weight_t: [C, K] (= W.T of the Linear head), bias: [K].
    Casts W to `param_dtype` (bf16 halves the dominant weight HBM stream; f32 also allowed),
    pads the class dim to the lane tile, and pre-folds the bias to 2*b.
    """
    c, k = weight_t.shape
    tn = _col_tile(k)
    ncols = pl.cdiv(k, tn)
    kp = ncols * tn
    w = weight_t.astype(param_dtype)
    b2 = (2.0 * bias).astype(jnp.float32)          # pred = feat @ W + 2*b (mean + full head)
    if kp != k:
        w = jnp.pad(w, ((0, 0), (0, kp - k)))
        b2 = jnp.pad(b2, (0, kp - k))
    return {"w": w, "b2": b2.reshape(1, kp), "k": k, "tn": tn}


def trn_cls_kernel(*refs, s, inv_s):
    """refs = (x_ref, scale_ref_0..scale_ref_{s-1}, w_ref, b2_ref, o_ref).

    x_ref / scale_ref_i : [tm, C]  f32 (raw activations)
    w_ref               : [C, tn]  param dtype (bf16 or f32)
    b2_ref              : [1, tn]  f32 (pre-folded 2*bias)
    o_ref               : [tm, tn] f32
    """
    x_ref = refs[0]
    scale_refs = refs[1:1 + s]
    w_ref, b2_ref, o_ref = refs[1 + s], refs[2 + s], refs[3 + s]

    # Linearity of the shared Linear head:
    #   pred = mean_i(x_i @ W + b) + (x @ W + b) = (x + (1/S) * sum_i x_i) @ W + 2*b
    # Combine in f32 on the VPU; single MXU matmul with f32 accumulation.
    ssum = scale_refs[0][...].astype(jnp.float32)
    for r in scale_refs[1:]:
        ssum = ssum + r[...].astype(jnp.float32)
    feat = x_ref[...].astype(jnp.float32) + ssum * inv_s

    y = jnp.dot(feat.astype(w_ref.dtype), w_ref[...],
                preferred_element_type=jnp.float32)
    o_ref[...] = (y + b2_ref[...]).astype(o_ref.dtype)


def trn_cls_forward(x, x_list, params, *, tm_cap=None):
    """x: [N, C, 1, 1]; x_list: list of [N, C, 1, 1]; params from prepare_cls_head_params."""
    n, c = x.shape[0], x.shape[1]
    s = len(x_list)
    w, b2, k, tn = params["w"], params["b2"], params["k"], params["tn"]
    kp = w.shape[1]

    # ClsHead with with_avg_pool=False and 1x1 temp/sp feat size: flatten to [N, C].
    x_flat = x.reshape(n, c)
    x_list_flat = [xi.reshape(n, c) for xi in x_list]
    # TODO(synk): Dropout(p=0.5) from ClsHead omitted — identity in eval/inference mode.

    vmem_cap = _vmem_capacity_bytes()
    if tm_cap is None:
        # Bigger row tiles on 128 MiB VMEM parts (v5e/v6e), conservative on v7x (64 MiB).
        tm_cap = 512 if vmem_cap >= (96 << 20) else 256
    # No rounding of N up to a tile multiple:
    #  - small batch: one full-row block (block dim == array dim, no padding/masking)
    #  - large batch: 8-aligned tiles, ragged last tile handled by masked reads/writes.
    tm = n if n <= tm_cap else tm_cap
    grid = (pl.cdiv(n, tm), kp // tn)

    row_spec = pl.BlockSpec((tm, c), lambda i, j: (i, 0))   # resident across the Kp axis
    w_spec = pl.BlockSpec((c, tn), lambda i, j: (0, j))     # streamed per column tile
    b_spec = pl.BlockSpec((1, tn), lambda i, j: (0, j))
    out_spec = pl.BlockSpec((tm, tn), lambda i, j: (i, j))

    # VMEM budget: (1+S) double-buffered f32 activation tiles + double-buffered weight/bias
    # column tiles + double-buffered f32 output tile, 1.5x headroom, <= 75% of capacity.
    w_itemsize = jnp.dtype(w.dtype).itemsize
    need = ((1 + s) * 2 * tm * c * 4
            + 2 * c * tn * w_itemsize
            + 2 * tn * 4
            + 2 * tm * tn * 4)
    vmem_limit = int(min(max(int(1.5 * need), 4 << 20), int(0.75 * vmem_cap)))

    pred = pl.pallas_call(
        functools.partial(trn_cls_kernel, s=s, inv_s=1.0 / s),
        out_shape=jax.ShapeDtypeStruct((n, k), jnp.float32),
        grid=grid,
        in_specs=[row_spec] + [row_spec] * s + [w_spec, b_spec],
        out_specs=out_spec,
        compiler_params=pltpu.CompilerParams(
            dimension_semantics=("parallel", "parallel"),
            vmem_limit_bytes=vmem_limit,
        ),
    )(x_flat, *x_list_flat, w, b2)

    # (x, x_list, pred) with trailing 1x1 spatial dims squeezed.
    return x_flat, x_list_flat, pred


def reference_forward(x, x_list, weight_t, bias):
    """Pure-JAX reference of the PyTorch forward."""
    n, c = x.shape[0], x.shape[1]
    xf = x.reshape(n, c)
    pred_full = xf @ weight_t + bias
    preds = [xi.reshape(n, c) @ weight_t + bias for xi in x_list]
    pred = jnp.mean(jnp.stack(preds, axis=-1), axis=-1) + pred_full
    return xf, [xi.reshape(n, c) for xi in x_list], pred


if __name__ == "__main__":
    # Small, module-consistent shapes:
    #   batch N=2, in_channels C=256 (stand-in for num_bottleneck=2048),
    #   num_classes K=100 (stand-in for 400; NOT a multiple of 128 to exercise masking),
    #   S=3 multi-scale feature maps, each [N, C, 1, 1].
    N, C, K, S = 2, 256, 100, 3

    key = jax.random.PRNGKey(0)
    kx, kw, kb, *kls = jax.random.split(key, 3 + S)

    x = jax.random.normal(kx, (N, C, 1, 1), dtype=jnp.float32)
    x_list = [jax.random.normal(kl, (N, C, 1, 1), dtype=jnp.float32) for kl in kls]

    # Deterministic Linear(C -> K) parameters (xavier-uniform-ish scale); weight stored as W.T.
    limit = float(np.sqrt(6.0 / (C + K)))
    weight_t = jax.random.uniform(kw, (C, K), minval=-limit, maxval=limit, dtype=jnp.float32)
    bias = jax.random.uniform(kb, (K,), minval=-0.01, maxval=0.01, dtype=jnp.float32)

    x_ref_out, x_list_ref_out, pred_ref = reference_forward(x, x_list, weight_t, bias)

    # f32 parameters: tight correctness check (fold only reassociates f32 additions).
    params_f32 = prepare_cls_head_params(weight_t, bias, param_dtype=jnp.float32)
    x_out, x_list_out, pred = trn_cls_forward(x, x_list, params_f32)
    jax.block_until_ready(pred)
    np.testing.assert_allclose(np.asarray(pred), np.asarray(pred_ref), rtol=1e-4, atol=1e-4)
    np.testing.assert_allclose(np.asarray(x_out), np.asarray(x_ref_out))
    for a, b in zip(x_list_out, x_list_ref_out):
        np.testing.assert_allclose(np.asarray(a), np.asarray(b))

    # bf16 weight (recommended fast path on v5e/v6e/v7x) with f32 accumulation: loose check.
    params_bf16 = prepare_cls_head_params(weight_t, bias, param_dtype=jnp.bfloat16)
    _, _, pred_bf16 = trn_cls_forward(x, x_list, params_bf16)
    jax.block_until_ready(pred_bf16)
    np.testing.assert_allclose(np.asarray(pred_bf16), np.asarray(pred_ref),
                               rtol=5e-2, atol=1e-1)

    # Larger non-multiple batch with a small forced row tile: exercises the tiled grid,
    # the ragged (masked) last row tile, and the Kp grid axis — still cheap.
    N2 = 37
    key2 = jax.random.PRNGKey(1)
    kx2, *kls2 = jax.random.split(key2, 1 + S)
    x2 = jax.random.normal(kx2, (N2, C, 1, 1), dtype=jnp.float32)
    x_list2 = [jax.random.normal(kl, (N2, C, 1, 1), dtype=jnp.float32) for kl in kls2]
    _, _, pred2_ref = reference_forward(x2, x_list2, weight_t, bias)
    _, _, pred2 = trn_cls_forward(x2, x_list2, params_f32, tm_cap=16)
    jax.block_until_ready(pred2)
    np.testing.assert_allclose(np.asarray(pred2), np.asarray(pred2_ref), rtol=1e-4, atol=1e-4)

    print("KERNEL_OK")
</pallas_src>

<mosaic_0001>
module attributes {stable_mosaic.version = 11 : i64} {
  func.func @trn_cls_kernel(%arg0: i32, %arg1: i32, %arg2: memref<2x256xf32, #tpu.memory_space<vmem>>, %arg3: memref<2x256xf32, #tpu.memory_space<vmem>>, %arg4: memref<2x256xf32, #tpu.memory_space<vmem>>, %arg5: memref<2x256xf32, #tpu.memory_space<vmem>>, %arg6: memref<256x128xf32, #tpu.memory_space<vmem>>, %arg7: memref<1x128xf32, #tpu.memory_space<vmem>>, %arg8: memref<2x128xf32, #tpu.memory_space<vmem>>) attributes {dimension_semantics = [#tpu.dimension_semantics<parallel>, #tpu.dimension_semantics<parallel>], iteration_bounds = array<i64: 1, 1>, scalar_prefetch = 0 : i64, scratch_operands = 0 : i64, tpu.core_type = #tpu.core_type<tc>, window_params = [{transform_indices = @transform_0, window_bounds = array<i64: 2, 256>}, {transform_indices = @transform_1, window_bounds = array<i64: 2, 256>}, {transform_indices = @transform_2, window_bounds = array<i64: 2, 256>}, {transform_indices = @transform_3, window_bounds = array<i64: 2, 256>}, {transform_indices = @transform_4, window_bounds = array<i64: 256, 128>}, {transform_indices = @transform_5, window_bounds = array<i64: 1, 128>}, {transform_indices = @transform_6, window_bounds = array<i64: 2, 128>}]} {
    %c0 = arith.constant 0 : index
    %c0_0 = arith.constant 0 : index
    %0 = vector.load %arg3[%c0, %c0_0] : memref<2x256xf32, #tpu.memory_space<vmem>>, vector<2x256xf32>
    %c0_1 = arith.constant 0 : index
    %c0_2 = arith.constant 0 : index
    %1 = vector.load %arg4[%c0_1, %c0_2] : memref<2x256xf32, #tpu.memory_space<vmem>>, vector<2x256xf32>
    %2 = arith.addf %0, %1 : vector<2x256xf32>
    %c0_3 = arith.constant 0 : index
    %c0_4 = arith.constant 0 : index
    %3 = vector.load %arg5[%c0_3, %c0_4] : memref<2x256xf32, #tpu.memory_space<vmem>>, vector<2x256xf32>
    %4 = arith.addf %2, %3 : vector<2x256xf32>
    %c0_5 = arith.constant 0 : index
    %c0_6 = arith.constant 0 : index
    %5 = vector.load %arg2[%c0_5, %c0_6] : memref<2x256xf32, #tpu.memory_space<vmem>>, vector<2x256xf32>
    %cst = arith.constant 0.333333343 : f32
    %6 = vector.broadcast %cst : f32 to vector<2x256xf32>
    %7 = arith.mulf %4, %6 : vector<2x256xf32>
    %8 = arith.addf %5, %7 : vector<2x256xf32>
    %c0_7 = arith.constant 0 : index
    %c0_8 = arith.constant 0 : index
    %9 = vector.load %arg6[%c0_7, %c0_8] : memref<256x128xf32, #tpu.memory_space<vmem>>, vector<256x128xf32>
    %cst_9 = arith.constant dense<0.000000e+00> : vector<2x128xf32>
    %10 = tpu.matmul %8, %9, %cst_9 {dimension_numbers = #tpu.dot_dimension_numbers<[1], [0], [0], [1], [0, 0, 1, 1], [], []>} : vector<2x256xf32>, vector<256x128xf32>, vector<2x128xf32> -> vector<2x128xf32>
    %c0_10 = arith.constant 0 : index
    %c0_11 = arith.constant 0 : index
    %11 = vector.load %arg7[%c0_10, %c0_11] : memref<1x128xf32, #tpu.memory_space<vmem>>, vector<1x128xf32>
    %12 = vector.broadcast %11 : vector<1x128xf32> to vector<2x128xf32>
    %13 = arith.addf %10, %12 : vector<2x128xf32>
    %c0_12 = arith.constant 0 : index
    %c0_13 = arith.constant 0 : index
    %14 = vector.load %arg8[%c0_12, %c0_13] : memref<2x128xf32, #tpu.memory_space<vmem>>, vector<2x128xf32>
    tpu.vector_store %arg8[%c0_12, %c0_13], %13 {strides = array<i32>} : memref<2x128xf32, #tpu.memory_space<vmem>>, vector<2x128xf32>,
    return
  }
  func.func @transform_0(%arg0: i32, %arg1: i32) -> (i32, i32) {
    %c0_i32 = arith.constant 0 : i32
    %c0_i32_0 = arith.constant 0 : i32
    return %arg0, %c0_i32 : i32, i32
  }
  func.func @transform_1(%arg0: i32, %arg1: i32) -> (i32, i32) {
    %c0_i32 = arith.constant 0 : i32
    %c0_i32_0 = arith.constant 0 : i32
    return %arg0, %c0_i32 : i32, i32
  }
  func.func @transform_2(%arg0: i32, %arg1: i32) -> (i32, i32) {
    %c0_i32 = arith.constant 0 : i32
    %c0_i32_0 = arith.constant 0 : i32
    return %arg0, %c0_i32 : i32, i32
  }
  func.func @transform_3(%arg0: i32, %arg1: i32) -> (i32, i32) {
    %c0_i32 = arith.constant 0 : i32
    %c0_i32_0 = arith.constant 0 : i32
    return %arg0, %c0_i32 : i32, i32
  }
  func.func @transform_4(%arg0: i32, %arg1: i32) -> (i32, i32) {
    %c0_i32 = arith.constant 0 : i32
    %c0_i32_0 = arith.constant 0 : i32
    return %c0_i32, %arg1 : i32, i32
  }
  func.func @transform_5(%arg0: i32, %arg1: i32) -> (i32, i32) {
    %c0_i32 = arith.constant 0 : i32
    %c0_i32_0 = arith.constant 0 : i32
    return %c0_i32, %arg1 : i32, i32
  }
  func.func @transform_6(%arg0: i32, %arg1: i32) -> (i32, i32) {
    %c0_i32 = arith.constant 0 : i32
    return %arg0, %arg1 : i32, i32
  }
}

</mosaic_0001>

<bundles_post_ra>
// kernel: tpu_custom_call.1
= control target key start
LH: loop header
LB: loop body
LE: loop exit
PB: predicated region body
PF: predicated region fallthrough
CT: control target
= control target key end

     0   :  { %11 = vsyncpa [#allocation3], 0  ;;  %s474_s0 = inlined_call_operand.hbm [shape: f32[2,256], index: 0, kind: input, shape index: {}]   ;;  %s475_s1 = inlined_call_operand.hbm [shape: f32[2,256], index: 1, kind: input, shape index: {}]   ;;  %s476_s2 = inlined_call_operand.vmem [shape: f32[2,256], index: 2, kind: input, shape index: {}]   ;;  %s477_s3 = inlined_call_operand.vmem [shape: f32[2,256], index: 3, kind: input, shape index: {}]   ;;  %s478_s4 = inlined_call_operand.hbm [shape: f32[256,128], index: 4, kind: input, shape index: {}]   ;;  %s479_s5 = inlined_call_operand.vmem [shape: f32[1,128], index: 5, kind: input, shape index: {}]   ;;  %s480_s6 = inlined_call_operand.hbm [shape: f32[2,100], index: 6, kind: output, shape index: {}]  }
   0x1   :  { %12 = vsyncpa [#allocation6], 0 }
   0x2   :  { %13 = vsyncpa [#allocation4], 0  ;;  %s375_s21 = smov [#allocation5]   ;;  %s376_s23 = smov [#allocation2]  }
   0x3   :  { %s30_s22 = sshll.u32 %s375_s21, 4  ;;  %s20_s24 = sshll.u32 %s376_s23, 4  ;;  %s31_s22 = int_to_ptr.vmem [resolvable:$true] %s30_s22  ;;  %s21_s24 = int_to_ptr.vmem [resolvable:$true] %s20_s24 }
   0x4   :  { %s281_s27 = scalar_lea.hbm %s475_s1, 64 }
   0x5   :  { %p282_p0 = scmp.ne.s32.totalorder %s475_s1, %s281_s27  ;;  %p285_p1 = scmp.lt.u32.totalorder %s281_s27, %s475_s1 }
   0x7   :  { %p287_p2 = pnand %p285_p1, %p282_p0 }
   0x9   :  { %290 = shalt.err (!%p287_p2)
}
   0xa   :  { %s291_s8 = scalar_lea.vmem %s31_s22, 64  ;;  %p296_p4 = scmp.lt.s32.totalorder %s31_s22, %s31_s22 }
   0xb   :  { %p292_p3 = scmp.ne.s32.totalorder %s31_s22, %s291_s8  ;;  %p297_p5 = scmp.lt.s32.totalorder %s291_s8, %s291_s8 }
   0xd   :  { %p298_p6 = por %p297_p5, %p296_p4 }
   0xf   :  { %p299_p7 = pnand %p298_p6, %p292_p3 }
  0x11   :  { %302 = shalt.err (!%p299_p7)
}
  0x12   :  { %33 = dma.hbm_to_vmem [thread:$0]  %s475_s1, 64, %s31_s22, [#allocation6]  }
  0x13   :  { %s303_s13 = scalar_lea.hbm %s474_s0, 64 }
  0x14   :  { %p304_p8 = scmp.ne.s32.totalorder %s474_s0, %s303_s13  ;;  %p307_p9 = scmp.lt.u32.totalorder %s303_s13, %s474_s0 }
  0x16   :  { %p309_p10 = pnand %p307_p9, %p304_p8 }
  0x18   :  { %312 = shalt.err (!%p309_p10)
}
  0x19   :  { %s313_s18 = scalar_lea.vmem %s21_s24, 64  ;;  %p318_p12 = scmp.lt.s32.totalorder %s21_s24, %s21_s24 }
  0x1a   :  { %p314_p11 = scmp.ne.s32.totalorder %s21_s24, %s313_s18  ;;  %p319_p13 = scmp.lt.s32.totalorder %s313_s18, %s313_s18 }
  0x1c   :  { %p320_p0 = por %p319_p13, %p318_p12 }
  0x1e   :  { %p321_p1 = pnand %p320_p0, %p314_p11 }
  0x20   :  { %324 = shalt.err (!%p321_p1)
}
  0x21   :  { %23 = dma.hbm_to_vmem [thread:$0]  %s474_s0, 64, %s21_s24, [#allocation3]  }
  0x22   :  { %s377_s20 = smov [#allocation7]   ;;  %s325_s25 = scalar_lea.hbm %s478_s4, 4096 }
  0x23   :  { %s43_s21 = sshll.u32 %s377_s20, 4  ;;  %p326_p2 = scmp.ne.s32.totalorder %s478_s4, %s325_s25  ;;  %s44_s21 = int_to_ptr.vmem [resolvable:$true] %s43_s21 }
  0x24   :  { %p329_p3 = scmp.lt.u32.totalorder %s325_s25, %s478_s4 }
  0x26   :  { %p331_p4 = pnand %p329_p3, %p326_p2 }
  0x28   :  { %334 = shalt.err (!%p331_p4)
}
  0x29   :  { %s335_s30 = scalar_lea.vmem %s44_s21, 4096  ;;  %p340_p6 = scmp.lt.s32.totalorder %s44_s21, %s44_s21 }
  0x2a   :  { %p336_p5 = scmp.ne.s32.totalorder %s44_s21, %s335_s30  ;;  %p341_p7 = scmp.lt.s32.totalorder %s335_s30, %s335_s30 }
  0x2c   :  { %p342_p8 = por %p341_p7, %p340_p6 }
  0x2e   :  { %p343_p9 = pnand %p342_p8, %p336_p5 }
  0x30   :  { %346 = shalt.err (!%p343_p9)
}
  0x31   :  { %s378_s0 = smov 128   ;;  %s379_s24 = smov 8  }
  0x32   :  { %49 = dma.hbm_to_vmem [thread:$0]  %s478_s4, 4096, %s44_s21, [#allocation6], %s378_s0, %s378_s0, %s379_s24  }
  0x33   :  { %369 = dma.done.wait [#allocation3], 64  }
  0x34   :  { %370 = vsyncadd [#allocation3], 4294967232 }
  0x35   :  { %371 = dma.done.wait [#allocation6], 4160  }
  0x36   :  { %372 = vsyncadd [#allocation6], 4294963136  ;;  %v85_v0 = vld [vmem:[#allocation7 + $0x80] sm:$0xff]  ;;  %v86_v1 = vld [vmem:[#allocation7 + $0x88] sm:$0xff]  ;;  %v380_v20 = vmov 1983009808   ;;  %v112_v22 = vlaneseq }
  0x37   :  { %v69_v2 = vld [vmem:[#allocation7] sm:$0xff]  ;;  %v242_v3 = vpack.c.bf16 %v86_v1, %v85_v0  ;;  %v70_v4 = vld [vmem:[#allocation7 + $0x8] sm:$0xff]  ;;  %v87_v5 = vld [vmem:[#allocation7 + $0x90] sm:$0xff]  ;;  %v110_v21 = vunpack.c.l.s4 %v380_v20  ;;  %s381_s12 = smov [#allocation8]  }
  0x38   :  { %v88_v6 = vld [vmem:[#allocation7 + $0x98] sm:$0xff]  ;;  %v244_v7 = vpack.c.bf16 %v70_v4, %v69_v2  ;;  %v71_v9 = vld [vmem:[#allocation7 + $0x10] sm:$0xff]  ;;  %v89_v11 = vld [vmem:[#allocation7 + $0xa0] sm:$0xff]  ;;  %v113_v34 = vshrl.u32 %v112_v22, 7  ;;  %s196_s13 = sshll.u32 %s381_s12, 4  ;;  %s197_s13 = int_to_ptr.vmem [resolvable:$true] %s196_s13 }
  0x39   :  { %v246_v8 = vpack.c.bf16 %v88_v6, %v87_v5  ;;  %v72_v10 = vld [vmem:[#allocation7 + $0x18] sm:$0xff]  ;;  %243 = vmatprep.subr.bf16.mxu0 %v242_v3  ;;  %v90_v12 = vld [vmem:[#allocation7 + $0xa8] sm:$0xff]  ;;  %v73_v15 = vld [vmem:[#allocation7 + $0x20] sm:$0xff]  ;;  %v111_v33 = vunpack.c.0.s8 %v110_v21  ;;  %s347_s14 = scalar_lea.vmem %s197_s13, 32  ;;  %p352_p11 = scmp.lt.s32.totalorder %s197_s13, %s197_s13 }
  0x3a   :  { %245 = vmatpush3.bf16.msra.mxu0 %v244_v7  ;;  %v248_v13 = vpack.c.bf16 %v72_v10, %v71_v9  ;;  %v250_v14 = vpack.c.bf16 %v90_v12, %v89_v11  ;;  %v74_v16 = vld [vmem:[#allocation7 + $0x28] sm:$0xff]  ;;  %v91_v17 = vld [vmem:[#allocation7 + $0xb0] sm:$0xff]  ;;  %v92_v18 = vld [vmem:[#allocation7 + $0xb8] sm:$0xff]  ;;  %p348_p10 = scmp.ne.s32.totalorder %s197_s13, %s347_s14  ;;  %p353_p12 = scmp.lt.s32.totalorder %s347_s14, %s347_s14 }
  0x3b   :  { %247 = vmatprep.subr.bf16.mxu0 %v246_v8  ;;  %v252_v19 = vpack.c.bf16 %v74_v16, %v73_v15  ;;  %v254_v23 = vpack.c.bf16 %v92_v18, %v91_v17  ;;  %v75_v24 = vld [vmem:[#allocation7 + $0x30] sm:$0xff]  ;;  %v76_v25 = vld [vmem:[#allocation7 + $0x38] sm:$0xff]  ;;  %v93_v26 = vld [vmem:[#allocation7 + $0xc0] sm:$0xff]  ;;  %v114_v44 = vsub.s32 %v111_v33, %v113_v34 }
  0x3c   :  { %v94_v27 = vld [vmem:[#allocation7 + $0xc8] sm:$0xff]  ;;  %v61_v28 = vld [vmem:[#allocation5] sm:$0xf]  ;;  %v62_v29 = vld [vmem:[%s476_s2] sm:$0xf]  ;;  %v256_v31 = vpack.c.bf16 %v76_v25, %v75_v24  ;;  %p354_p13 = por %p353_p12, %p352_p11 }
  0x3d   :  { %v64_v30 = vld [vmem:[%s477_s3] sm:$0xf]  ;;  %v63_v32 = vadd.f32 %v62_v29, %v61_v28  ;;  %v258_v35 = vpack.c.bf16 %v94_v27, %v93_v26  ;;  %v77_v36 = vld [vmem:[#allocation7 + $0x40] sm:$0xff]  ;;  %v78_v37 = vld [vmem:[#allocation7 + $0x48] sm:$0xff] }
  0x3e   :  { %249 = vmatpush3.bf16.msra.mxu0 %v248_v13  ;;  %v95_v38 = vld [vmem:[#allocation7 + $0xd0] sm:$0xff]  ;;  %v96_v39 = vld [vmem:[#allocation7 + $0xd8] sm:$0xff]  ;;  %v260_v42 = vpack.c.bf16 %v78_v37, %v77_v36  ;;  %v97_v48 = vld [vmem:[#allocation7 + $0xe0] sm:$0xff]  ;;  %p355_p0 = pnand %p354_p13, %p348_p10 }
  0x3f   :  { %251 = vmatprep.subr.bf16.mxu0 %v250_v14  ;;  %v65_v40 = vadd.f32 %v64_v30, %v63_v32  ;;  %v66_v41 = vld [vmem:[#allocation2] sm:$0xf]  ;;  %v262_v45 = vpack.c.bf16 %v96_v39, %v95_v38  ;;  %v79_v46 = vld [vmem:[#allocation7 + $0x50] sm:$0xff]  ;;  %v98_v49 = vld [vmem:[#allocation7 + $0xe8] sm:$0xff] }
  0x40   :  { %v80_v47 = vld [vmem:[#allocation7 + $0x58] sm:$0xff]  ;;  %v266_v53 = vpack.c.bf16 %v98_v49, %v97_v48  ;;  %v81_v54 = vld [vmem:[#allocation7 + $0x60] sm:$0xff]  ;;  %v82_v55 = vld [vmem:[#allocation7 + $0x68] sm:$0xff] }
  0x41   :  { %v67_v43 = vmul.f32 0.33333334, %v65_v40  ;;  %v264_v51 = vpack.c.bf16 %v80_v47, %v79_v46  ;;  %v99_v56 = vld [vmem:[#allocation7 + $0xf0] sm:$0xff]  ;;  %v100_v57 = vld [vmem:[#allocation7 + $0xf8] sm:$0xff]  ;;  %v268_v59 = vpack.c.bf16 %v82_v55, %v81_v54 }
  0x42   :  { %253 = vmatpush3.bf16.msra.mxu0 %v252_v19  ;;  %v270_v60 = vpack.c.bf16 %v100_v57, %v99_v56  ;;  %v83_v61 = vld [vmem:[#allocation7 + $0x70] sm:$0xff]  ;;  %v84_v62 = vld [vmem:[#allocation7 + $0x78] sm:$0xff] }
  0x43   :  { %255 = vmatprep.subr.bf16.mxu0 %v254_v23  ;;  %v68_v50 = vadd.f32 %v67_v43, %v66_v41  ;;  %v272_v63 = vpack.c.bf16 %v84_v62, %v83_v61  ;;  %v206_v1 = vld [vmem:[%s479_s5] ss:$0 sm:$0xff] }
  0x45   :  { %v115_v52 = vrot.slane %v68_v50, %v114_v44 }
  0x46   :  { %257 = vmatpush3.bf16.msra.mxu0 %v256_v31 }
  0x47   :  { %259 = vmatprep.subr.bf16.mxu0 %v258_v35  ;;  %v116_v58 = vcombine.high %v115_v52, %v115_v52 }
  0x49   :  { %183 = vmatprep.mubr.f32.mxu0 %v116_v58 }
  0x4a   :  { %261 = vmatpush3.bf16.msra.mxu0 %v260_v42 }
  0x4b   :  { %263 = vmatprep.subr.bf16.mxu0 %v262_v45 }
  0x4e   :  { %265 = vmatpush3.bf16.msra.mxu0 %v264_v51 }
  0x4f   :  { %267 = vmatprep.subr.bf16.mxu0 %v266_v53 }
  0x52   :  { %269 = vmatpush3.bf16.msra.mxu0 %v268_v59 }
  0x53   :  { %271 = vmatprep.subr.bf16.mxu0 %v270_v60 }
  0x56   :  { %273 = vmatpush3.bf16.msra.mxu0 %v272_v63 }
  0x59   :  { %184 = vmatmul.mubr.f32.vlgmr.msra.gmra.mrb[0].mxu0 %v115_v52 }
 0x12c   :  { %v239_v0 = vpop.f32.mrb[0].mxu0 }
 0x12d   :  { %v240_v2 = vpop.f32.mrb[1].mxu0 }
 0x12e   :  { %v241_v3 = vadd.f32 %v240_v2, %v239_v0 }
 0x130   :  { %v186_v4 = vadd.f32 %v241_v3, %v206_v1 }
 0x132   :  { %189 = vst [vmem:[#allocation8] sm:$0x3] %v186_v4 }
 0x133   :  { %358 = shalt.err (!%p355_p0)
}
 0x134   :  { %s359_s17 = scalar_lea.hbm %s480_s6, 32 }
 0x135   :  { %p360_p1 = scmp.ne.s32.totalorder %s480_s6, %s359_s17  ;;  %p363_p2 = scmp.lt.u32.totalorder %s359_s17, %s480_s6 }
 0x137   :  { %p365_p3 = pnand %p363_p2, %p360_p1 }
 0x139   :  { %368 = shalt.err (!%p365_p3)
}
 0x13a   :  { %199 = dma.vmem_to_hbm [thread:$0]  %s197_s13, 32, %s480_s6, [#allocation4]  }
 0x13b   :  { %373 = dma.done.wait [#allocation4], 32  }
 0x13c   :  { %374 = vsyncadd [#allocation4], 4294967264 }
 0x13d   :  { %203 = vsyncpa [#allocation3], 1 }
 0x13e   :  { %204 = vsyncpa [#allocation6], 1 }
 0x13f   :  { %205 = vsyncpa [#allocation4], 1 }

</bundles_post_ra>
